<compile_context>
chip_gen: v5e
topology: v5e:2x2
jax: 0.10.0
libtpu: 0.0.40
codegen_flags: <defaults>
</compile_context>

<pallas_src>
import math

import numpy as np
import jax
import jax.numpy as jnp
from jax.experimental import pallas as pl
from jax.experimental.pallas import tpu as pltpu

# ----------------------------- small config ---------------------------------
HIDDEN = 128
NUM_HEADS = 4
HEAD_DIM = HIDDEN // NUM_HEADS            # 32
HALF_DIM = HEAD_DIM // 2                  # 16
NUM_KV_HEADS = 2
NUM_Q_PER_KV = NUM_HEADS // NUM_KV_HEADS  # 2
QKV_OUT = NUM_KV_HEADS * (NUM_Q_PER_KV + 2) * HEAD_DIM  # 256 (packed qkv width)
Q_WIDTH = NUM_HEADS * HEAD_DIM            # 128
KV_WIDTH = NUM_KV_HEADS * HEAD_DIM        # 64
ROPE_WIDTH = Q_WIDTH + KV_WIDTH           # 192 (q|k region that gets RoPE)
N_ROPE_HEADS = NUM_HEADS + NUM_KV_HEADS   # 6
ROPE_BASE = 10000.0
ROPE_POSITION_SCALE = 1.0                 # config.rope_position_scale (linear rope)
SCALE = 1.0 / math.sqrt(HEAD_DIM)         # mup_use_scaling = False path
SEQ = 16
NEG_BIAS = -1e30                          # finite mask value (diagonal always live)


# --------------------------- fused Pallas kernel -----------------------------
def _phi3_attn_fused_kernel(x_ref, wqkv_ref, bqkv_ref, cos_ref, sin1_ref, sin2_ref,
                            wo_ref, bo_ref, o_ref):
    x = x_ref[...]                                              # [T, HIDDEN] f32
    T = x.shape[0]

    # 1) fused QKV projection (columns pre-permuted to [q | k | v], q columns
    #    pre-scaled by SCALE).  Weights may be bf16; accumulate in f32.
    xq = x.astype(wqkv_ref.dtype)
    qkv = jnp.dot(xq, wqkv_ref[...],
                  preferred_element_type=jnp.float32) + bqkv_ref[...]   # [T, 256]

    # 2) neox RoPE without any MXU work / rot-matrix constant.
    #    rotate_half = two static lane rolls masked by half-specific signed sin:
    #      roll_dn[i] = qkv[i+16]  -> partner x2 at first-half lanes (sin1 = -sin there)
    #      roll_up[i] = qkv[i-16]  -> partner x1 at second-half lanes (sin2 = +sin there)
    #    v lanes: cos = 1, sin1 = sin2 = 0 -> pass-through.
    roll_dn = jnp.concatenate([qkv[:, HALF_DIM:], qkv[:, :HALF_DIM]], axis=-1)
    roll_up = jnp.concatenate([qkv[:, -HALF_DIM:], qkv[:, :-HALF_DIM]], axis=-1)
    roped = qkv * cos_ref[...] + roll_dn * sin1_ref[...] + roll_up * sin2_ref[...]

    q = roped[:, :Q_WIDTH]                                      # [T, 128] (already scaled)
    k = roped[:, Q_WIDTH:ROPE_WIDTH]                            # [T, 64]
    v = qkv[:, ROPE_WIDTH:]                                     # [T, 64] (no RoPE on values)

    # 3) per-head causal scores (small MXU dots), stacked along sublanes so the
    #    softmax runs ONCE for all heads.
    row = jax.lax.broadcasted_iota(jnp.int32, (T, T), 0)
    col = jax.lax.broadcasted_iota(jnp.int32, (T, T), 1)
    causal_bias = jnp.where(col <= row, 0.0, NEG_BIAS).astype(jnp.float32)

    scores = []
    for h in range(NUM_HEADS):
        g = h // NUM_Q_PER_KV
        q_h = q[:, h * HEAD_DIM:(h + 1) * HEAD_DIM]             # [T, D]
        k_g = k[:, g * HEAD_DIM:(g + 1) * HEAD_DIM]             # [T, D]
        s = jax.lax.dot_general(q_h, k_g, (((1,), (1,)), ((), ())),
                                preferred_element_type=jnp.float32)     # [T, T]
        scores.append(s + causal_bias)
    s_all = jnp.concatenate(scores, axis=0)                     # [H*T, T]

    # 4) one batched softmax (single max / exp / sum / approx-reciprocal)
    m = jnp.max(s_all, axis=-1, keepdims=True)
    p_all = jnp.exp(s_all - m)
    denom = jnp.sum(p_all, axis=-1, keepdims=True)
    inv = pl.reciprocal(denom, approx=True)                     # EUP, not VALU divide

    # 5) PV + fused output projection: normalize the small [T, D] context tile,
    #    then accumulate ctx_h @ Wo[h*D:(h+1)*D, :] in f32 (no lane concat).
    wo = wo_ref[...]
    out = None
    for h in range(NUM_HEADS):
        g = h // NUM_Q_PER_KV
        p_h = p_all[h * T:(h + 1) * T, :]                       # [T, T]
        v_g = v[:, g * HEAD_DIM:(g + 1) * HEAD_DIM]             # [T, D]
        ctx = jnp.dot(p_h, v_g, preferred_element_type=jnp.float32)
        ctx = ctx * inv[h * T:(h + 1) * T, :]                   # normalize [T, D] tile
        wo_h = wo[h * HEAD_DIM:(h + 1) * HEAD_DIM, :]           # [D, HIDDEN]
        contrib = jnp.dot(ctx.astype(wo.dtype), wo_h,
                          preferred_element_type=jnp.float32)
        out = contrib if out is None else out + contrib
    out = out + bo_ref[...]
    o_ref[...] = out.astype(o_ref.dtype)                        # lane-dense [T, HIDDEN]


# --------------------- constant / table preprocessing ------------------------
def _packed_qkv_permutation():
    """Column permutation turning the module's interleaved qkv layout into
    [q heads (kv-group major) | k heads | v heads] — matches the reference's
    view(..., num_kv, num_q_per_kv + 2, head_dim).split ordering."""
    perm = []
    group = (NUM_Q_PER_KV + 2) * HEAD_DIM
    for g in range(NUM_KV_HEADS):                    # q heads: h = g*nq + j
        for j in range(NUM_Q_PER_KV):
            base = g * group + j * HEAD_DIM
            perm.extend(range(base, base + HEAD_DIM))
    for g in range(NUM_KV_HEADS):                    # k heads
        base = g * group + NUM_Q_PER_KV * HEAD_DIM
        perm.extend(range(base, base + HEAD_DIM))
    for g in range(NUM_KV_HEADS):                    # v heads
        base = g * group + (NUM_Q_PER_KV + 1) * HEAD_DIM
        perm.extend(range(base, base + HEAD_DIM))
    return np.asarray(perm, dtype=np.int32)


def _rope_tables(positions):
    """Packed [T, QKV_OUT] tables for the roll-based neox RoPE:
       cos   : cos on q|k lanes, 1 on v lanes
       sin1  : -sin on first-half lanes of each q|k head, 0 elsewhere (pairs roll_dn)
       sin2  : +sin on second-half lanes of each q|k head, 0 elsewhere (pairs roll_up)"""
    T = positions.shape[0]
    inv_freq = 1.0 / (ROPE_BASE ** (jnp.arange(0, HEAD_DIM, 2, dtype=jnp.float32)
                                    / HEAD_DIM))                       # [D/2]
    angles = (positions.astype(jnp.float32) / ROPE_POSITION_SCALE)[:, None] * inv_freq[None, :]
    cos = jnp.cos(angles)                                              # [T, D/2]
    sin = jnp.sin(angles)
    zeros = jnp.zeros_like(sin)
    cos_head = jnp.concatenate([cos, cos], axis=-1)                    # [T, D]
    sin1_head = jnp.concatenate([-sin, zeros], axis=-1)
    sin2_head = jnp.concatenate([zeros, sin], axis=-1)
    cos_p = jnp.concatenate([jnp.tile(cos_head, (1, N_ROPE_HEADS)),
                             jnp.ones((T, KV_WIDTH), jnp.float32)], axis=-1)
    sin1_p = jnp.concatenate([jnp.tile(sin1_head, (1, N_ROPE_HEADS)),
                              jnp.zeros((T, KV_WIDTH), jnp.float32)], axis=-1)
    sin2_p = jnp.concatenate([jnp.tile(sin2_head, (1, N_ROPE_HEADS)),
                              jnp.zeros((T, KV_WIDTH), jnp.float32)], axis=-1)
    return cos_p, sin1_p, sin2_p


def _prepare_params(params, mxu_dtype):
    """One-time (load-time in production) weight preprocessing: qkv column
    permutation, attention-scale fold into the q columns, optional bf16 cast of
    the MXU weight matrices (biases stay f32 — they are VPU adds)."""
    wqkv, bqkv, wo, bo = params
    perm = _packed_qkv_permutation()
    scale_col = jnp.concatenate([jnp.full((Q_WIDTH,), SCALE, jnp.float32),
                                 jnp.ones((QKV_OUT - Q_WIDTH,), jnp.float32)])
    wqkv_p = (wqkv[:, perm] * scale_col[None, :]).astype(mxu_dtype)
    bqkv_p = (bqkv[perm] * scale_col).reshape(1, QKV_OUT).astype(jnp.float32)
    wo_p = wo.astype(mxu_dtype)
    bo_p = bo.reshape(1, HIDDEN).astype(jnp.float32)
    return wqkv_p, bqkv_p, wo_p, bo_p


def phi3_small_attention_forward(positions, hidden_states, params,
                                 mxu_dtype=jnp.float32):
    T = hidden_states.shape[0]
    wqkv_p, bqkv_p, wo_p, bo_p = _prepare_params(params, mxu_dtype)
    cos_p, sin1_p, sin2_p = _rope_tables(positions)

    def full(shape):
        return pl.BlockSpec(shape, lambda i, _n=len(shape): (0,) * _n)

    return pl.pallas_call(
        _phi3_attn_fused_kernel,
        out_shape=jax.ShapeDtypeStruct((T, HIDDEN), hidden_states.dtype),
        grid=(1,),
        in_specs=[
            full((T, HIDDEN)),          # x
            full((HIDDEN, QKV_OUT)),    # permuted + scaled qkv weight (f32 or bf16)
            full((1, QKV_OUT)),         # permuted + scaled qkv bias (f32)
            full((T, QKV_OUT)),         # packed cos table
            full((T, QKV_OUT)),         # packed signed sin (first halves)
            full((T, QKV_OUT)),         # packed signed sin (second halves)
            full((HIDDEN, HIDDEN)),     # output proj weight (f32 or bf16)
            full((1, HIDDEN)),          # output proj bias (f32)
        ],
        out_specs=full((T, HIDDEN)),
        compiler_params=pltpu.CompilerParams(
            dimension_semantics=("arbitrary",)),
    )(hidden_states, wqkv_p, bqkv_p, cos_p, sin1_p, sin2_p, wo_p, bo_p)


# ------------------------- pure-JAX reference --------------------------------
def apply_rope(positions, q, k):
    """Neox-style RoPE with linear position scaling. q: [T,H,D], k: [T,Hkv,D]."""
    half = HEAD_DIM // 2
    inv_freq = 1.0 / (ROPE_BASE ** (jnp.arange(0, HEAD_DIM, 2, dtype=jnp.float32)
                                    / HEAD_DIM))
    angles = (positions.astype(jnp.float32) / ROPE_POSITION_SCALE)[:, None] * inv_freq[None, :]
    cos = jnp.cos(angles)[:, None, :]
    sin = jnp.sin(angles)[:, None, :]

    def rot(x):
        x1 = x[..., :half]
        x2 = x[..., half:]
        return jnp.concatenate([x1 * cos - x2 * sin, x2 * cos + x1 * sin], axis=-1)

    return rot(q).astype(q.dtype), rot(k).astype(k.dtype)


def reference_forward(positions, hidden_states, params):
    wqkv, bqkv, wo, bo = params
    T = hidden_states.shape[0]
    qkv = hidden_states @ wqkv + bqkv
    qkv = qkv.reshape(T, NUM_KV_HEADS, NUM_Q_PER_KV + 2, HEAD_DIM)
    q = qkv[:, :, :NUM_Q_PER_KV, :].reshape(T, NUM_HEADS, HEAD_DIM)
    k = qkv[:, :, NUM_Q_PER_KV, :]
    v = qkv[:, :, NUM_Q_PER_KV + 1, :]
    q, k = apply_rope(positions, q, k)
    kk = jnp.repeat(k, NUM_Q_PER_KV, axis=1)
    vv = jnp.repeat(v, NUM_Q_PER_KV, axis=1)
    s = jnp.einsum("thd,shd->hts", q, kk) * SCALE
    mask = jnp.tril(jnp.ones((T, T), dtype=bool))
    s = jnp.where(mask[None], s, -jnp.inf)
    p = jax.nn.softmax(s, axis=-1)
    o = jnp.einsum("hts,shd->thd", p, vv).reshape(T, HIDDEN)
    return o @ wo + bo


# --------------------------------- main ---------------------------------------
if __name__ == "__main__":
    key = jax.random.PRNGKey(0)
    k1, k2, k3, k4, k5 = jax.random.split(key, 5)

    wqkv = 0.02 * jax.random.normal(k1, (HIDDEN, QKV_OUT), dtype=jnp.float32)
    bqkv = 0.01 * jax.random.normal(k2, (QKV_OUT,), dtype=jnp.float32)
    wo = 0.02 * jax.random.normal(k3, (HIDDEN, HIDDEN), dtype=jnp.float32)
    bo = 0.01 * jax.random.normal(k4, (HIDDEN,), dtype=jnp.float32)
    params = (wqkv, bqkv, wo, bo)

    hidden_states = jax.random.normal(k5, (SEQ, HIDDEN), dtype=jnp.float32)
    positions = jnp.arange(SEQ, dtype=jnp.int32)

    ref = reference_forward(positions, hidden_states, params)

    # f32-weight path: tight check of the algorithm (tolerance covers the EUP
    # approximate reciprocal used for the softmax normalization).
    out_f32 = jax.block_until_ready(
        phi3_small_attention_forward(positions, hidden_states, params, jnp.float32))
    assert out_f32.shape == (SEQ, HIDDEN)
    assert jnp.allclose(out_f32, ref, rtol=2e-3, atol=2e-3), "f32 kernel mismatch vs reference"

    # bf16-weight path (v6e/v7x recommendation: bf16 MXU operands for the
    # weight-bearing matmuls, f32 accumulation, f32 VPU math) — looser tolerance
    # accounts for bf16 weight rounding.
    out_bf16 = jax.block_until_ready(
        phi3_small_attention_forward(positions, hidden_states, params, jnp.bfloat16))
    assert out_bf16.shape == (SEQ, HIDDEN)
    assert jnp.allclose(out_bf16, ref, rtol=3e-2, atol=3e-2), "bf16 kernel mismatch vs reference"

    print("KERNEL_OK")
</pallas_src>

<mosaic_0001>
module attributes {stable_mosaic.version = 11 : i64} {
  func.func @_phi3_attn_fused_kernel(%arg0: i32, %arg1: memref<16x128xf32, #tpu.memory_space<vmem>>, %arg2: memref<128x256xf32, #tpu.memory_space<vmem>>, %arg3: memref<1x256xf32, #tpu.memory_space<vmem>>, %arg4: memref<16x256xf32, #tpu.memory_space<vmem>>, %arg5: memref<16x256xf32, #tpu.memory_space<vmem>>, %arg6: memref<16x256xf32, #tpu.memory_space<vmem>>, %arg7: memref<128x128xf32, #tpu.memory_space<vmem>>, %arg8: memref<1x128xf32, #tpu.memory_space<vmem>>, %arg9: memref<16x128xf32, #tpu.memory_space<vmem>>) attributes {dimension_semantics = [#tpu.dimension_semantics<arbitrary>], iteration_bounds = array<i64: 1>, scalar_prefetch = 0 : i64, scratch_operands = 0 : i64, tpu.core_type = #tpu.core_type<tc>, window_params = [{pipeline_mode = #tpu.pipeline_mode<synchronous>, transform_indices = @transform_0, window_bounds = array<i64: 16, 128>}, {pipeline_mode = #tpu.pipeline_mode<synchronous>, transform_indices = @transform_1, window_bounds = array<i64: 128, 256>}, {pipeline_mode = #tpu.pipeline_mode<synchronous>, transform_indices = @transform_2, window_bounds = array<i64: 1, 256>}, {pipeline_mode = #tpu.pipeline_mode<synchronous>, transform_indices = @transform_3, window_bounds = array<i64: 16, 256>}, {pipeline_mode = #tpu.pipeline_mode<synchronous>, transform_indices = @transform_4, window_bounds = array<i64: 16, 256>}, {pipeline_mode = #tpu.pipeline_mode<synchronous>, transform_indices = @transform_5, window_bounds = array<i64: 16, 256>}, {pipeline_mode = #tpu.pipeline_mode<synchronous>, transform_indices = @transform_6, window_bounds = array<i64: 128, 128>}, {pipeline_mode = #tpu.pipeline_mode<synchronous>, transform_indices = @transform_7, window_bounds = array<i64: 1, 128>}, {pipeline_mode = #tpu.pipeline_mode<synchronous>, transform_indices = @transform_8, window_bounds = array<i64: 16, 128>}]} {
    %c0 = arith.constant 0 : index
    %c0_0 = arith.constant 0 : index
    %0 = vector.load %arg1[%c0, %c0_0] : memref<16x128xf32, #tpu.memory_space<vmem>>, vector<16x128xf32>
    %c0_1 = arith.constant 0 : index
    %c0_2 = arith.constant 0 : index
    %1 = vector.load %arg2[%c0_1, %c0_2] : memref<128x256xf32, #tpu.memory_space<vmem>>, vector<128x256xf32>
    %cst = arith.constant dense<0.000000e+00> : vector<16x256xf32>
    %2 = tpu.matmul %0, %1, %cst {dimension_numbers = #tpu.dot_dimension_numbers<[1], [0], [0], [1], [0, 0, 1, 1], [], []>} : vector<16x128xf32>, vector<128x256xf32>, vector<16x256xf32> -> vector<16x256xf32>
    %c0_3 = arith.constant 0 : index
    %c0_4 = arith.constant 0 : index
    %3 = vector.load %arg3[%c0_3, %c0_4] : memref<1x256xf32, #tpu.memory_space<vmem>>, vector<1x256xf32>
    %4 = vector.broadcast %3 : vector<1x256xf32> to vector<16x256xf32>
    %5 = arith.addf %2, %4 : vector<16x256xf32>
    %6 = vector.extract_strided_slice %5 {offsets = [0, 16], sizes = [16, 240], strides = [1, 1]} : vector<16x256xf32> to vector<16x240xf32>
    %7 = vector.extract_strided_slice %5 {offsets = [0, 0], sizes = [16, 16], strides = [1, 1]} : vector<16x256xf32> to vector<16x16xf32>
    %8 = tpu.concatenate %6, %7 in 1 : vector<16x240xf32>, vector<16x16xf32> -> vector<16x256xf32>
    %9 = vector.extract_strided_slice %5 {offsets = [0, 240], sizes = [16, 16], strides = [1, 1]} : vector<16x256xf32> to vector<16x16xf32>
    %10 = vector.extract_strided_slice %5 {offsets = [0, 0], sizes = [16, 240], strides = [1, 1]} : vector<16x256xf32> to vector<16x240xf32>
    %11 = tpu.concatenate %9, %10 in 1 : vector<16x16xf32>, vector<16x240xf32> -> vector<16x256xf32>
    %c0_5 = arith.constant 0 : index
    %c0_6 = arith.constant 0 : index
    %12 = vector.load %arg4[%c0_5, %c0_6] : memref<16x256xf32, #tpu.memory_space<vmem>>, vector<16x256xf32>
    %13 = arith.mulf %5, %12 : vector<16x256xf32>
    %c0_7 = arith.constant 0 : index
    %c0_8 = arith.constant 0 : index
    %14 = vector.load %arg5[%c0_7, %c0_8] : memref<16x256xf32, #tpu.memory_space<vmem>>, vector<16x256xf32>
    %15 = arith.mulf %8, %14 : vector<16x256xf32>
    %16 = arith.addf %13, %15 : vector<16x256xf32>
    %c0_9 = arith.constant 0 : index
    %c0_10 = arith.constant 0 : index
    %17 = vector.load %arg6[%c0_9, %c0_10] : memref<16x256xf32, #tpu.memory_space<vmem>>, vector<16x256xf32>
    %18 = arith.mulf %11, %17 : vector<16x256xf32>
    %19 = arith.addf %16, %18 : vector<16x256xf32>
    %20 = vector.extract_strided_slice %19 {offsets = [0, 0], sizes = [16, 128], strides = [1, 1]} : vector<16x256xf32> to vector<16x128xf32>
    %21 = vector.extract_strided_slice %19 {offsets = [0, 128], sizes = [16, 64], strides = [1, 1]} : vector<16x256xf32> to vector<16x64xf32>
    %22 = vector.extract_strided_slice %5 {offsets = [0, 192], sizes = [16, 64], strides = [1, 1]} : vector<16x256xf32> to vector<16x64xf32>
    %23 = tpu.iota {dimensions = array<i32: 0>} : vector<16x16xi32>
    %24 = tpu.iota {dimensions = array<i32: 1>} : vector<16x16xi32>
    %25 = arith.cmpi sle, %24, %23 : vector<16x16xi32>
    %cst_11 = arith.constant 0.000000e+00 : f32
    %cst_12 = arith.constant -1.000000e+30 : f32
    %26 = vector.broadcast %cst_11 : f32 to vector<16x16xf32>
    %27 = vector.broadcast %cst_12 : f32 to vector<16x16xf32>
    %28 = arith.select %25, %26, %27 : vector<16x16xi1>, vector<16x16xf32>
    %29 = vector.extract_strided_slice %20 {offsets = [0, 0], sizes = [16, 32], strides = [1, 1]} : vector<16x128xf32> to vector<16x32xf32>
    %30 = vector.extract_strided_slice %21 {offsets = [0, 0], sizes = [16, 32], strides = [1, 1]} : vector<16x64xf32> to vector<16x32xf32>
    %cst_13 = arith.constant dense<0.000000e+00> : vector<16x16xf32>
    %31 = tpu.matmul %29, %30, %cst_13 {dimension_numbers = #tpu.dot_dimension_numbers<[1], [1], [0], [0], [0, 0, 1, 0], [], []>} : vector<16x32xf32>, vector<16x32xf32>, vector<16x16xf32> -> vector<16x16xf32>
    %32 = arith.addf %31, %28 : vector<16x16xf32>
    %33 = vector.extract_strided_slice %20 {offsets = [0, 32], sizes = [16, 32], strides = [1, 1]} : vector<16x128xf32> to vector<16x32xf32>
    %34 = vector.extract_strided_slice %21 {offsets = [0, 0], sizes = [16, 32], strides = [1, 1]} : vector<16x64xf32> to vector<16x32xf32>
    %cst_14 = arith.constant dense<0.000000e+00> : vector<16x16xf32>
    %35 = tpu.matmul %33, %34, %cst_14 {dimension_numbers = #tpu.dot_dimension_numbers<[1], [1], [0], [0], [0, 0, 1, 0], [], []>} : vector<16x32xf32>, vector<16x32xf32>, vector<16x16xf32> -> vector<16x16xf32>
    %36 = arith.addf %35, %28 : vector<16x16xf32>
    %37 = vector.extract_strided_slice %20 {offsets = [0, 64], sizes = [16, 32], strides = [1, 1]} : vector<16x128xf32> to vector<16x32xf32>
    %38 = vector.extract_strided_slice %21 {offsets = [0, 32], sizes = [16, 32], strides = [1, 1]} : vector<16x64xf32> to vector<16x32xf32>
    %cst_15 = arith.constant dense<0.000000e+00> : vector<16x16xf32>
    %39 = tpu.matmul %37, %38, %cst_15 {dimension_numbers = #tpu.dot_dimension_numbers<[1], [1], [0], [0], [0, 0, 1, 0], [], []>} : vector<16x32xf32>, vector<16x32xf32>, vector<16x16xf32> -> vector<16x16xf32>
    %40 = arith.addf %39, %28 : vector<16x16xf32>
    %41 = vector.extract_strided_slice %20 {offsets = [0, 96], sizes = [16, 32], strides = [1, 1]} : vector<16x128xf32> to vector<16x32xf32>
    %42 = vector.extract_strided_slice %21 {offsets = [0, 32], sizes = [16, 32], strides = [1, 1]} : vector<16x64xf32> to vector<16x32xf32>
    %cst_16 = arith.constant dense<0.000000e+00> : vector<16x16xf32>
    %43 = tpu.matmul %41, %42, %cst_16 {dimension_numbers = #tpu.dot_dimension_numbers<[1], [1], [0], [0], [0, 0, 1, 0], [], []>} : vector<16x32xf32>, vector<16x32xf32>, vector<16x16xf32> -> vector<16x16xf32>
    %44 = arith.addf %43, %28 : vector<16x16xf32>
    %45 = tpu.concatenate %32, %36, %40, %44 in 0 : vector<16x16xf32>, vector<16x16xf32>, vector<16x16xf32>, vector<16x16xf32> -> vector<64x16xf32>
    %cst_17 = arith.constant dense<0xFF800000> : vector<64xf32>
    %46 = vector.multi_reduction <maximumf>, %45, %cst_17 [1] : vector<64x16xf32> to vector<64xf32>
    %47 = vector.shape_cast %46 : vector<64xf32> to vector<64x1xf32>
    %48 = vector.broadcast %47 : vector<64x1xf32> to vector<64x16xf32>
    %49 = arith.subf %45, %48 : vector<64x16xf32>
    %50 = math.exp %49 : vector<64x16xf32>
    %cst_18 = arith.constant dense<0.000000e+00> : vector<64xf32>
    %51 = vector.multi_reduction <add>, %50, %cst_18 [1] : vector<64x16xf32> to vector<64xf32>
    %52 = vector.shape_cast %51 : vector<64xf32> to vector<64x1xf32>
    %53 = tpu.reciprocal %52 {approx = true} : vector<64x1xf32> -> vector<64x1xf32>
    %c0_19 = arith.constant 0 : index
    %c0_20 = arith.constant 0 : index
    %54 = vector.load %arg7[%c0_19, %c0_20] : memref<128x128xf32, #tpu.memory_space<vmem>>, vector<128x128xf32>
    %55 = vector.extract_strided_slice %50 {offsets = [0, 0], sizes = [16, 16], strides = [1, 1]} : vector<64x16xf32> to vector<16x16xf32>
    %56 = vector.extract_strided_slice %22 {offsets = [0, 0], sizes = [16, 32], strides = [1, 1]} : vector<16x64xf32> to vector<16x32xf32>
    %cst_21 = arith.constant dense<0.000000e+00> : vector<16x32xf32>
    %57 = tpu.matmul %55, %56, %cst_21 {dimension_numbers = #tpu.dot_dimension_numbers<[1], [0], [0], [1], [0, 0, 1, 1], [], []>} : vector<16x16xf32>, vector<16x32xf32>, vector<16x32xf32> -> vector<16x32xf32>
    %58 = vector.extract_strided_slice %53 {offsets = [0, 0], sizes = [16, 1], strides = [1, 1]} : vector<64x1xf32> to vector<16x1xf32>
    %59 = vector.broadcast %58 : vector<16x1xf32> to vector<16x32xf32>
    %60 = arith.mulf %57, %59 : vector<16x32xf32>
    %61 = vector.extract_strided_slice %54 {offsets = [0, 0], sizes = [32, 128], strides = [1, 1]} : vector<128x128xf32> to vector<32x128xf32>
    %cst_22 = arith.constant dense<0.000000e+00> : vector<16x128xf32>
    %62 = tpu.matmul %60, %61, %cst_22 {dimension_numbers = #tpu.dot_dimension_numbers<[1], [0], [0], [1], [0, 0, 1, 1], [], []>} : vector<16x32xf32>, vector<32x128xf32>, vector<16x128xf32> -> vector<16x128xf32>
    %63 = vector.extract_strided_slice %50 {offsets = [16, 0], sizes = [16, 16], strides = [1, 1]} : vector<64x16xf32> to vector<16x16xf32>
    %64 = vector.extract_strided_slice %22 {offsets = [0, 0], sizes = [16, 32], strides = [1, 1]} : vector<16x64xf32> to vector<16x32xf32>
    %cst_23 = arith.constant dense<0.000000e+00> : vector<16x32xf32>
    %65 = tpu.matmul %63, %64, %cst_23 {dimension_numbers = #tpu.dot_dimension_numbers<[1], [0], [0], [1], [0, 0, 1, 1], [], []>} : vector<16x16xf32>, vector<16x32xf32>, vector<16x32xf32> -> vector<16x32xf32>
    %66 = vector.extract_strided_slice %53 {offsets = [16, 0], sizes = [16, 1], strides = [1, 1]} : vector<64x1xf32> to vector<16x1xf32>
    %67 = vector.broadcast %66 : vector<16x1xf32> to vector<16x32xf32>
    %68 = arith.mulf %65, %67 : vector<16x32xf32>
    %69 = vector.extract_strided_slice %54 {offsets = [32, 0], sizes = [32, 128], strides = [1, 1]} : vector<128x128xf32> to vector<32x128xf32>
    %cst_24 = arith.constant dense<0.000000e+00> : vector<16x128xf32>
    %70 = tpu.matmul %68, %69, %cst_24 {dimension_numbers = #tpu.dot_dimension_numbers<[1], [0], [0], [1], [0, 0, 1, 1], [], []>} : vector<16x32xf32>, vector<32x128xf32>, vector<16x128xf32> -> vector<16x128xf32>
    %71 = arith.addf %62, %70 : vector<16x128xf32>
    %72 = vector.extract_strided_slice %50 {offsets = [32, 0], sizes = [16, 16], strides = [1, 1]} : vector<64x16xf32> to vector<16x16xf32>
    %73 = vector.extract_strided_slice %22 {offsets = [0, 32], sizes = [16, 32], strides = [1, 1]} : vector<16x64xf32> to vector<16x32xf32>
    %cst_25 = arith.constant dense<0.000000e+00> : vector<16x32xf32>
    %74 = tpu.matmul %72, %73, %cst_25 {dimension_numbers = #tpu.dot_dimension_numbers<[1], [0], [0], [1], [0, 0, 1, 1], [], []>} : vector<16x16xf32>, vector<16x32xf32>, vector<16x32xf32> -> vector<16x32xf32>
    %75 = vector.extract_strided_slice %53 {offsets = [32, 0], sizes = [16, 1], strides = [1, 1]} : vector<64x1xf32> to vector<16x1xf32>
    %76 = vector.broadcast %75 : vector<16x1xf32> to vector<16x32xf32>
    %77 = arith.mulf %74, %76 : vector<16x32xf32>
    %78 = vector.extract_strided_slice %54 {offsets = [64, 0], sizes = [32, 128], strides = [1, 1]} : vector<128x128xf32> to vector<32x128xf32>
    %cst_26 = arith.constant dense<0.000000e+00> : vector<16x128xf32>
    %79 = tpu.matmul %77, %78, %cst_26 {dimension_numbers = #tpu.dot_dimension_numbers<[1], [0], [0], [1], [0, 0, 1, 1], [], []>} : vector<16x32xf32>, vector<32x128xf32>, vector<16x128xf32> -> vector<16x128xf32>
    %80 = arith.addf %71, %79 : vector<16x128xf32>
    %81 = vector.extract_strided_slice %50 {offsets = [48, 0], sizes = [16, 16], strides = [1, 1]} : vector<64x16xf32> to vector<16x16xf32>
    %82 = vector.extract_strided_slice %22 {offsets = [0, 32], sizes = [16, 32], strides = [1, 1]} : vector<16x64xf32> to vector<16x32xf32>
    %cst_27 = arith.constant dense<0.000000e+00> : vector<16x32xf32>
    %83 = tpu.matmul %81, %82, %cst_27 {dimension_numbers = #tpu.dot_dimension_numbers<[1], [0], [0], [1], [0, 0, 1, 1], [], []>} : vector<16x16xf32>, vector<16x32xf32>, vector<16x32xf32> -> vector<16x32xf32>
    %84 = vector.extract_strided_slice %53 {offsets = [48, 0], sizes = [16, 1], strides = [1, 1]} : vector<64x1xf32> to vector<16x1xf32>
    %85 = vector.broadcast %84 : vector<16x1xf32> to vector<16x32xf32>
    %86 = arith.mulf %83, %85 : vector<16x32xf32>
    %87 = vector.extract_strided_slice %54 {offsets = [96, 0], sizes = [32, 128], strides = [1, 1]} : vector<128x128xf32> to vector<32x128xf32>
    %cst_28 = arith.constant dense<0.000000e+00> : vector<16x128xf32>
    %88 = tpu.matmul %86, %87, %cst_28 {dimension_numbers = #tpu.dot_dimension_numbers<[1], [0], [0], [1], [0, 0, 1, 1], [], []>} : vector<16x32xf32>, vector<32x128xf32>, vector<16x128xf32> -> vector<16x128xf32>
    %89 = arith.addf %80, %88 : vector<16x128xf32>
    %c0_29 = arith.constant 0 : index
    %c0_30 = arith.constant 0 : index
    %90 = vector.load %arg8[%c0_29, %c0_30] : memref<1x128xf32, #tpu.memory_space<vmem>>, vector<1x128xf32>
    %91 = vector.broadcast %90 : vector<1x128xf32> to vector<16x128xf32>
    %92 = arith.addf %89, %91 : vector<16x128xf32>
    %c0_31 = arith.constant 0 : index
    %c0_32 = arith.constant 0 : index
    %93 = vector.load %arg9[%c0_31, %c0_32] : memref<16x128xf32, #tpu.memory_space<vmem>>, vector<16x128xf32>
    tpu.vector_store %arg9[%c0_31, %c0_32], %92 {strides = array<i32>} : memref<16x128xf32, #tpu.memory_space<vmem>>, vector<16x128xf32>,
    return
  }
  func.func @transform_0(%arg0: i32) -> (i32, i32) {
    %c0_i32 = arith.constant 0 : i32
    %c0_i32_0 = arith.constant 0 : i32
    %c0_i32_1 = arith.constant 0 : i32
    return %c0_i32, %c0_i32_0 : i32, i32
  }
  func.func @transform_1(%arg0: i32) -> (i32, i32) {
    %c0_i32 = arith.constant 0 : i32
    %c0_i32_0 = arith.constant 0 : i32
    %c0_i32_1 = arith.constant 0 : i32
    return %c0_i32, %c0_i32_0 : i32, i32
  }
  func.func @transform_2(%arg0: i32) -> (i32, i32) {
    %c0_i32 = arith.constant 0 : i32
    %c0_i32_0 = arith.constant 0 : i32
    %c0_i32_1 = arith.constant 0 : i32
    return %c0_i32, %c0_i32_0 : i32, i32
  }
  func.func @transform_3(%arg0: i32) -> (i32, i32) {
    %c0_i32 = arith.constant 0 : i32
    %c0_i32_0 = arith.constant 0 : i32
    %c0_i32_1 = arith.constant 0 : i32
    return %c0_i32, %c0_i32_0 : i32, i32
  }
  func.func @transform_4(%arg0: i32) -> (i32, i32) {
    %c0_i32 = arith.constant 0 : i32
    %c0_i32_0 = arith.constant 0 : i32
    %c0_i32_1 = arith.constant 0 : i32
    return %c0_i32, %c0_i32_0 : i32, i32
  }
  func.func @transform_5(%arg0: i32) -> (i32, i32) {
    %c0_i32 = arith.constant 0 : i32
    %c0_i32_0 = arith.constant 0 : i32
    %c0_i32_1 = arith.constant 0 : i32
    return %c0_i32, %c0_i32_0 : i32, i32
  }
  func.func @transform_6(%arg0: i32) -> (i32, i32) {
    %c0_i32 = arith.constant 0 : i32
    %c0_i32_0 = arith.constant 0 : i32
    %c0_i32_1 = arith.constant 0 : i32
    return %c0_i32, %c0_i32_0 : i32, i32
  }
  func.func @transform_7(%arg0: i32) -> (i32, i32) {
    %c0_i32 = arith.constant 0 : i32
    %c0_i32_0 = arith.constant 0 : i32
    %c0_i32_1 = arith.constant 0 : i32
    return %c0_i32, %c0_i32_0 : i32, i32
  }
  func.func @transform_8(%arg0: i32) -> (i32, i32) {
    %c0_i32 = arith.constant 0 : i32
    %c0_i32_0 = arith.constant 0 : i32
    %c0_i32_1 = arith.constant 0 : i32
    return %c0_i32, %c0_i32_0 : i32, i32
  }
}

</mosaic_0001>

<bundles_post_ra>
// kernel: tpu_custom_call.1
= control target key start
LH: loop header
LB: loop body
LE: loop exit
PB: predicated region body
PF: predicated region fallthrough
CT: control target
= control target key end

     0   :  { %13 = vsyncpa [#allocation3], 0  ;;  %s1298_s0 = inlined_call_operand.hbm [shape: f32[16,128], index: 0, kind: input, shape index: {}]   ;;  %s1299_s1 = inlined_call_operand.hbm [shape: f32[128,256], index: 1, kind: input, shape index: {}]   ;;  %s1300_s2 = inlined_call_operand.hbm [shape: f32[1,256], index: 2, kind: input, shape index: {}]   ;;  %s1301_s3 = inlined_call_operand.hbm [shape: f32[16,256], index: 3, kind: input, shape index: {}]   ;;  %s1302_s4 = inlined_call_operand.hbm [shape: f32[16,256], index: 4, kind: input, shape index: {}]   ;;  %s1303_s5 = inlined_call_operand.hbm [shape: f32[16,256], index: 5, kind: input, shape index: {}]   ;;  %s1304_s6 = inlined_call_operand.hbm [shape: f32[128,128], index: 6, kind: input, shape index: {}]   ;;  %s1305_s7 = inlined_call_operand.vmem [shape: f32[1,128], index: 7, kind: input, shape index: {}]   ;;  %s1306_s8 = inlined_call_operand.hbm [shape: f32[16,128], index: 8, kind: output, shape index: {}]  }
   0x1   :  { %14 = vsyncpa [#allocation6], 0 }
   0x2   :  { %15 = vsyncpa [#allocation9], 0 }
   0x3   :  { %16 = vsyncpa [#allocation12], 0  ;;  %s35_s29 = sshll.u32 %s1299_s1, 4  ;;  %s36_s29 = int_to_ptr.hbm [resolvable:$true] %s35_s29 }
   0x4   :  { %17 = vsyncpa [#allocation4], 0  ;;  %s1119_s30 = smov [#allocation5]   ;;  %s59_s12 = sshll.u32 %s1301_s3, 4  ;;  %s60_s12 = int_to_ptr.hbm [resolvable:$true] %s59_s12 }
   0x5   :  { %s37_s9 = sshll.u32 %s1119_s30, 4  ;;  %s1120_s13 = smov 256   ;;  %s38_s9 = int_to_ptr.vmem [resolvable:$true] %s37_s9 }
   0x6   :  { %s1121_s14 = smov 16   ;;  %s1122_s15 = smov [#allocation8]  }
   0x7   :  { %43 = dma.hbm_to_vmem [thread:$0]  %s36_s29, 4096, %s38_s9, [#allocation6], %s1120_s13, %s1120_s13, %s1121_s14  }
   0x8   :  { %s61_s16 = sshll.u32 %s1122_s15, 4  ;;  %s85_s18 = sshll.u32 %s1303_s5, 4  ;;  %s62_s16 = int_to_ptr.vmem [resolvable:$true] %s61_s16  ;;  %s86_s18 = int_to_ptr.hbm [resolvable:$true] %s85_s18 }
   0x9   :  { %67 = dma.hbm_to_vmem [thread:$0]  %s60_s12, 512, %s62_s16, [#allocation9], %s1120_s13, %s1120_s13, %s1121_s14  }
   0xa   :  { %s22_s20 = sshll.u32 %s1298_s0, 4  ;;  %s1123_s21 = smov [#allocation11]   ;;  %s23_s20 = int_to_ptr.hbm [resolvable:$true] %s22_s20 }
   0xb   :  { %s87_s22 = sshll.u32 %s1123_s21, 4  ;;  %s1124_s23 = smov [#allocation2]   ;;  %s88_s22 = int_to_ptr.vmem [resolvable:$true] %s87_s22 }
   0xc   :  { %93 = dma.hbm_to_vmem [thread:$0]  %s86_s18, 512, %s88_s22, [#allocation12], %s1120_s13, %s1120_s13, %s1121_s14  }
   0xd   :  { %s24_s5 = sshll.u32 %s1124_s23, 4  ;;  %s1125_s24 = smov 128   ;;  %s25_s5 = int_to_ptr.vmem [resolvable:$true] %s24_s5 }
   0xe   :  { %s1126_s25 = smov 8   ;;  %s49_s0 = sshll.u32 %s1300_s2, 4  ;;  %s50_s0 = int_to_ptr.hbm [resolvable:$true] %s49_s0 }
   0xf   :  { %30 = dma.hbm_to_vmem [thread:$0]  %s23_s20, 256, %s25_s5, [#allocation3], %s1125_s24, %s1125_s24, %s1126_s25  }
  0x10   :  { %s1127_s28 = smov [#allocation7]   ;;  %s72_s10 = sshll.u32 %s1302_s4, 4  ;;  %s73_s10 = int_to_ptr.hbm [resolvable:$true] %s72_s10 }
  0x11   :  { %s51_s29 = sshll.u32 %s1127_s28, 4  ;;  %s1128_s11 = smov [#allocation10]   ;;  %s52_s29 = int_to_ptr.vmem [resolvable:$true] %s51_s29 }
  0x12   :  { %54 = dma.hbm_to_vmem [thread:$0]  %s50_s0, 32, %s52_s29, [#allocation6]  }
  0x13   :  { %s74_s12 = sshll.u32 %s1128_s11, 4  ;;  %s98_s17 = sshll.u32 %s1304_s6, 4  ;;  %s75_s12 = int_to_ptr.vmem [resolvable:$true] %s74_s12  ;;  %s99_s17 = int_to_ptr.hbm [resolvable:$true] %s98_s17 }
  0x14   :  { %80 = dma.hbm_to_vmem [thread:$0]  %s73_s10, 512, %s75_s12, [#allocation9], %s1120_s13, %s1120_s13, %s1121_s14  }
  0x15   :  { %s1129_s2 = smov [#allocation13]  }
  0x16   :  { %s100_s1 = sshll.u32 %s1129_s2, 4  ;;  %s101_s1 = int_to_ptr.vmem [resolvable:$true] %s100_s1 }
  0x17   :  { %106 = dma.hbm_to_vmem [thread:$0]  %s99_s17, 2048, %s101_s1, [#allocation12], %s1125_s24, %s1125_s24, %s1126_s25  }
  0x18   :  { %1109 = dma.done.wait [#allocation3], 256  }
  0x19   :  { %1110 = vsyncadd [#allocation3], 4294967040 }
  0x1a   :  { %1111 = dma.done.wait [#allocation6], 4128  }
  0x1b   :  { %1112 = vsyncadd [#allocation6], 4294963168 }
  0x1c   :  { %1113 = dma.done.wait [#allocation9], 1024  }
  0x1d   :  { %1114 = vsyncadd [#allocation9], 4294966272 }
  0x1e   :  { %1115 = dma.done.wait [#allocation12], 2560  }
  0x1f   :  { %1116 = vsyncadd [#allocation12], 4294964736  ;;  %v169_v0 = vld [vmem:[#allocation5 + $0xf0] sm:$0xff]  ;;  %v170_v1 = vld [vmem:[#allocation5 + $0xf8] sm:$0xff]  ;;  %s1130_s4 = smov 112   ;;  %vm256_vm0 = vcmask 130048  }
  0x20   :  { %v167_v2 = vld [vmem:[#allocation5 + $0xe0] sm:$0xff]  ;;  %177 = vmatpush.msra.mxu0 %v169_v0  ;;  %200 = vmatpush.msra.mxu1 %v170_v1  ;;  %v168_v3 = vld [vmem:[#allocation5 + $0xe8] sm:$0xff]  ;;  %v165_v4 = vld [vmem:[#allocation5 + $0xd0] sm:$0xff]  ;;  %vm235_vm1 = vcmask 916480   ;;  %s1131_s6 = smov 96   ;;  %vm306_vm2 = vcmask 261120  }
  0x21   :  { %v166_v5 = vld [vmem:[#allocation5 + $0xd8] sm:$0xff]  ;;  %v163_v6 = vld [vmem:[#allocation5 + $0xc0] sm:$0xff]  ;;  %v164_v7 = vld [vmem:[#allocation5 + $0xc8] sm:$0xff]  ;;  %s1132_s13 = smov 64   ;;  %s1135_s19 = smov [#allocation14]  }
  0x22   :  { %178 = vmatpush.msra.mxu0 %v167_v2  ;;  %201 = vmatpush.msra.mxu1 %v168_v3  ;;  %v161_v8 = vld [vmem:[#allocation5 + $0xb0] sm:$0xff]  ;;  %v162_v9 = vld [vmem:[#allocation5 + $0xb8] sm:$0xff]  ;;  %v159_v10 = vld [vmem:[#allocation5 + $0xa0] sm:$0xff]  ;;  %s807_s20 = sshll.u32 %s1135_s19, 4  ;;  %s809_s23 = sshll.u32 %s1306_s8, 4  ;;  %s808_s20 = int_to_ptr.vmem [resolvable:$true] %s807_s20  ;;  %s810_s23 = int_to_ptr.hbm [resolvable:$true] %s809_s23 }
  0x23   :  { %v160_v11 = vld [vmem:[#allocation5 + $0xa8] sm:$0xff]  ;;  %v157_v12 = vld [vmem:[#allocation5 + $0x90] sm:$0xff]  ;;  %v158_v13 = vld [vmem:[#allocation5 + $0x98] sm:$0xff] }
  0x24   :  { %179 = vmatpush.msra.mxu0 %v165_v4  ;;  %202 = vmatpush.msra.mxu1 %v166_v5  ;;  %v155_v14 = vld [vmem:[#allocation5 + $0x80] sm:$0xff]  ;;  %v156_v15 = vld [vmem:[#allocation5 + $0x88] sm:$0xff]  ;;  %v153_v16 = vld [vmem:[#allocation5 + $0x70] sm:$0xff] }
  0x25   :  { %v154_v17 = vld [vmem:[#allocation5 + $0x78] sm:$0xff]  ;;  %v151_v18 = vld [vmem:[#allocation5 + $0x60] sm:$0xff]  ;;  %v152_v19 = vld [vmem:[#allocation5 + $0x68] sm:$0xff] }
  0x26   :  { %180 = vmatpush.msra.mxu0 %v163_v6  ;;  %203 = vmatpush.msra.mxu1 %v164_v7  ;;  %v149_v20 = vld [vmem:[#allocation5 + $0x50] sm:$0xff]  ;;  %v150_v21 = vld [vmem:[#allocation5 + $0x58] sm:$0xff]  ;;  %v147_v22 = vld [vmem:[#allocation5 + $0x40] sm:$0xff] }
  0x27   :  { %v148_v23 = vld [vmem:[#allocation5 + $0x48] sm:$0xff]  ;;  %v145_v24 = vld [vmem:[#allocation5 + $0x30] sm:$0xff]  ;;  %v146_v25 = vld [vmem:[#allocation5 + $0x38] sm:$0xff] }
  0x28   :  { %181 = vmatpush.msra.mxu0 %v161_v8  ;;  %204 = vmatpush.msra.mxu1 %v162_v9  ;;  %v143_v26 = vld [vmem:[#allocation5 + $0x20] sm:$0xff]  ;;  %v144_v27 = vld [vmem:[#allocation5 + $0x28] sm:$0xff]  ;;  %v141_v28 = vld [vmem:[#allocation5 + $0x10] sm:$0xff] }
  0x29   :  { %v142_v29 = vld [vmem:[#allocation5 + $0x18] sm:$0xff]  ;;  %v139_v30 = vld [vmem:[#allocation5] sm:$0xff]  ;;  %v140_v31 = vld [vmem:[#allocation5 + $0x8] sm:$0xff] }
  0x2a   :  { %182 = vmatpush.msra.mxu0 %v159_v10  ;;  %205 = vmatpush.msra.mxu1 %v160_v11  ;;  %v137_v32 = vld [vmem:[#allocation2] sm:$0xff]  ;;  %v138_v33 = vld [vmem:[#allocation2 + $0x8] sm:$0xff]  ;;  %v171_v34 = vld [vmem:[#allocation7] sm:$0x3] }
  0x2b   :  { %v173_v35 = vperm.slane %v171_v34, 0  ;;  %v174_v36 = vperm.slane %v171_v34, 1  ;;  %v265_v49 = vld [vmem:[#allocation8] sm:$0xff]  ;;  %v275_v58 = vld [vmem:[#allocation10 + $0x10] sm:$0xff]  ;;  %v276_v61 = vld [vmem:[#allocation10 + $0x18] sm:$0xff] }
  0x2c   :  { %183 = vmatpush.msra.mxu0 %v157_v12  ;;  %206 = vmatpush.msra.mxu1 %v158_v13  ;;  %v273_v52 = vld [vmem:[#allocation10] sm:$0xff]  ;;  %v274_v63 = vld [vmem:[#allocation10 + $0x8] sm:$0xff]  ;;  %v267_v1 = vld [vmem:[#allocation8 + $0x10] sm:$0xff] }
  0x2d   :  { %v285_v54 = vld [vmem:[#allocation11] sm:$0xff]  ;;  %v268_v4 = vld [vmem:[#allocation8 + $0x18] sm:$0xff]  ;;  %v266_v6 = vld [vmem:[#allocation8 + $0x8] sm:$0xff] }
  0x2e   :  { %184 = vmatpush.msra.mxu0 %v155_v14  ;;  %207 = vmatpush.msra.mxu1 %v156_v15  ;;  %v287_v12 = vld [vmem:[#allocation11 + $0x10] sm:$0xff]  ;;  %v288_v13 = vld [vmem:[#allocation11 + $0x18] sm:$0xff] }
  0x30   :  { %185 = vmatpush.msra.mxu0 %v153_v16  ;;  %208 = vmatpush.msra.mxu1 %v154_v17 }
  0x32   :  { %186 = vmatpush.msra.mxu0 %v151_v18  ;;  %209 = vmatpush.msra.mxu1 %v152_v19  ;;  %v286_v18 = vld [vmem:[#allocation11 + $0x8] sm:$0xff] }
  0x34   :  { %187 = vmatpush.msra.mxu0 %v149_v20  ;;  %210 = vmatpush.msra.mxu1 %v150_v21 }
  0x36   :  { %188 = vmatpush.msra.mxu0 %v147_v22  ;;  %211 = vmatpush.msra.mxu1 %v148_v23 }
  0x38   :  { %189 = vmatpush.msra.mxu0 %v145_v24  ;;  %212 = vmatpush.msra.mxu1 %v146_v25 }
  0x3a   :  { %190 = vmatpush.msra.mxu0 %v143_v26  ;;  %213 = vmatpush.msra.mxu1 %v144_v27 }
  0x3c   :  { %191 = vmatpush.msra.mxu0 %v141_v28  ;;  %214 = vmatpush.msra.mxu1 %v142_v29 }
  0x3e   :  { %192 = vmatpush.msra.mxu0 %v139_v30  ;;  %215 = vmatpush.msra.mxu1 %v140_v31  ;;  %v297_v31 = vlaneseq }
  0x3f   :  { %193 = vmatmul.f32.vlgmr.msra.gmra.mxu0 %v137_v32  ;;  %216 = vmatmul.f32.vlgmr.msra.gmra.mxu1 %v137_v32 }
  0x40   :  { %v298_v32 = vshrl.u32 %v297_v31, 7  ;;  %v301_v34 = vand.u32 127, %v297_v31  ;;  %v523_v31 = vld [vmem:[#allocation13] sm:$0xff] }
  0x42   :  { %vm302_vm4 = vcmp.le.s32.totalorder %v301_v34, %v298_v32 }
  0x47   :  { %196 = vmatmul.f32.gmra.mxu0 %v138_v33  ;;  %219 = vmatmul.f32.gmra.mxu1 %v138_v33 }
  0xbc   :  { %v194_v37 = vpop.f32.mrf.mxu0  ;;  %v217_v38 = vpop.f32.mrf.mxu1 }
  0xbd   :  { %v195_v39 = vadd.f32 %v194_v37, %v173_v35  ;;  %v218_v40 = vadd.f32 %v217_v38, %v174_v36  ;;  %v1134_v38 = vmov -1e+30  }
  0xbf   :  { %246 = vrot.lane.b32.xlu1 %v218_v40, %s1121_s14  ;;  %227 = vrot.lane.b32.xlu0 %v195_v39, %s1130_s4  ;;  %v269_v57 = vmul.f32 %v265_v49, %v195_v39  ;;  %v270_v15 = vmul.f32 %v266_v6, %v218_v40 }
  0xc4   :  { %v197_v41 = vpop.f32.mrf.mxu0  ;;  %v220_v42 = vpop.f32.mrf.mxu1 }
  0xc5   :  { %v198_v43 = vadd.f32 %v197_v41, %v173_v35  ;;  %v221_v44 = vadd.f32 %v220_v42, %v174_v36  ;;  %v299_v35 = vadd.s32 8, %v298_v32 }
  0xc7   :  { %231 = vrot.lane.b32.xlu2 %v198_v43, %s1130_s4  ;;  %252 = vrot.lane.b32.xlu1 %v195_v39, %s1121_s14  ;;  %v1222_v45 = vpack.i.bf16 %v218_v40, %v221_v44  ;;  %v271_v10 = vmul.f32 %v267_v1, %v198_v43  ;;  %v272_v14 = vmul.f32 %v268_v4, %v221_v44 }
  0xc8   :  { %229 = vrot.lane.b32.xlu0 %v218_v40, %s1130_s4  ;;  %vm303_vm3 = vcmp.le.s32.totalorder %v301_v34, %v299_v35 }
  0xc9   :  { %v1242_v39 = vsel %vm303_vm3, 0.0, %v1134_v38 }
  0xcf   :  { %233 = vrot.lane.b32.xlu2 %v221_v44, %s1130_s4  ;;  %254 = vrot.lane.b32.xlu1 %v198_v43, %s1121_s14 }
  0xd0   :  { %248 = vrot.lane.b32.xlu0 %v221_v44, %s1121_s14  ;;  %s1133_s14 = smov 32   ;;  %v304_v44 = vsel %vm302_vm4, 0.0, %v1134_v38 }
 0x121   :  { %v232_v46 = vpop.permute.xlu2 %231 }
 0x129   :  { %v234_v50 = vpop.permute.xlu2 %233 }
 0x12a   :  { %v237_v59 = vsel %vm235_vm1, %v232_v46, %v234_v50  ;;  %v245_v62 = vsel %vm235_vm1, %v234_v50, %v232_v46 }
 0x12b   :  { %v279_v5 = vmul.f32 %v275_v58, %v237_v59  ;;  %v280_v7 = vmul.f32 %v276_v61, %v245_v62  ;;  %v527_v59 = vld [vmem:[#allocation13 + $0x20] sm:$0xff] }
 0x12d   :  { %v283_v17 = vadd.f32 %v279_v5, %v271_v10  ;;  %v284_v22 = vadd.f32 %v280_v7, %v272_v14 }
 0x131   :  { %v247_v47 = vpop.permute.xlu1 %246  ;;  %v228_v48 = vpop.permute.xlu0 %227 }
 0x139   :  { %v253_v51 = vpop.permute.xlu1 %252 }
 0x13a   :  { %v230_v53 = vpop.permute.xlu0 %229  ;;  %v263_v55 = vsel %vm256_vm0, %v247_v47, %v253_v51  ;;  %v257_v19 = vsel %vm256_vm0, %v253_v51, %v247_v47 }
 0x13b   :  { %v236_v56 = vsel %vm235_vm1, %v228_v48, %v230_v53  ;;  %v244_v0 = vsel %vm235_vm1, %v230_v53, %v228_v48  ;;  %v289_v2 = vmul.f32 %v285_v54, %v263_v55  ;;  %v290_v26 = vmul.f32 %v286_v18, %v257_v19  ;;  %v530_v55 = vld [vmem:[#allocation13 + $0x38] sm:$0xff] }
 0x13c   :  { %v277_v60 = vmul.f32 %v273_v52, %v236_v56  ;;  %v278_v8 = vmul.f32 %v274_v63, %v244_v0  ;;  %v529_v56 = vld [vmem:[#allocation13 + $0x30] sm:$0xff]  ;;  %625 = vmatpush.msrb.mxu0 %v530_v55 }
 0x13e   :  { %v281_v3 = vadd.f32 %v277_v60, %v269_v57  ;;  %v282_v23 = vadd.f32 %v278_v8, %v270_v15  ;;  %626 = vmatpush.msrb.mxu0 %v529_v56  ;;  %v528_v57 = vld [vmem:[#allocation13 + $0x28] sm:$0xff] }
 0x140   :  { %v293_v9 = vadd.f32 %v289_v2, %v281_v3  ;;  %v294_v29 = vadd.f32 %v290_v26, %v282_v23  ;;  %627 = vmatpush.msrb.mxu0 %v528_v57  ;;  %v525_v26 = vld [vmem:[#allocation13 + $0x10] sm:$0xff] }
 0x141   :  { %v255_v11 = vpop.permute.xlu1 %254 }
 0x142   :  { %v249_v16 = vpop.permute.xlu0 %248  ;;  %342 = vrot.lane.b32.xlu2 %v293_v9, %s1131_s6  ;;  %628 = vmatpush.msrb.mxu0 %v527_v59 }
 0x143   :  { %v258_v20 = vsel %vm256_vm0, %v255_v11, %v249_v16  ;;  %v264_v21 = vsel %vm256_vm0, %v249_v16, %v255_v11 }
 0x144   :  { %v291_v24 = vmul.f32 %v287_v12, %v264_v21  ;;  %v292_v25 = vmul.f32 %v288_v13, %v258_v20 }
 0x146   :  { %v295_v27 = vadd.f32 %v291_v24, %v283_v17  ;;  %v296_v28 = vadd.f32 %v292_v25, %v284_v22  ;;  %v526_v25 = vld [vmem:[#allocation13 + $0x18] sm:$0xff] }
 0x147   :  { %654 = vmatpush.msrb.mxu1 %v526_v25  ;;  %v536_v25 = vld [vmem:[#allocation13 + $0x68] sm:$0xff] }
 0x148   :  { %344 = vrot.lane.b32.xlu0 %v295_v27, %s1131_s6  ;;  %379 = vrot.lane.b32.xlu1 %v296_v28, %s1131_s6 }
 0x149   :  { %825 = vmatpush.xpose.msk.msra.mxu2 %vm306_vm2, %v296_v28  ;;  %829 = vmatpush.xpose.msk.msra.mxu3 %vm306_vm2, %v296_v28 }
 0x14a   :  { %377 = vrot.lane.b32.xlu2 %v294_v29, %s1131_s6  ;;  %655 = vmatpush.msrb.mxu1 %v525_v26  ;;  %v535_v26 = vld [vmem:[#allocation13 + $0x60] sm:$0xff] }
 0x14d   :  { %826 = vmatpush.xpose.msk.msra.mxu2 %vm306_vm2, %v294_v29  ;;  %830 = vmatpush.xpose.msk.msra.mxu3 %vm306_vm2, %v294_v29 }
 0x150   :  { %827 = vmatmul.msk.f32.vlgmr.msra.gmra.mxu2 %vm306_vm2, %v293_v9  ;;  %375 = vrot.lane.b32.xlu1 %v295_v27, %s1132_s13 }
 0x151   :  { %373 = vrot.lane.b32.xlu0 %v293_v9, %s1132_s13 }
 0x152   :  { %412 = vrot.lane.b32.xlu2 %v293_v9, %s1133_s14 }
 0x158   :  { %828 = vmatmul.msk.f32.gmra.mxu2 %vm306_vm2, %v295_v27 }
 0x159   :  { %414 = vrot.lane.b32.xlu0 %v295_v27, %s1133_s14  ;;  %v524_v27 = vld [vmem:[#allocation13 + $0x8] sm:$0xff] }
 0x15a   :  { %656 = vmatpush.msrb.mxu1 %v524_v27 }
 0x15c   :  { %657 = vmatpush.msrb.mxu1 %v523_v31 }
 0x161   :  { %875 = vrot.lane.b32.xlu0 %v1222_v45, %s1132_s13 }
 0x19c   :  { %v343_v30 = vpop.permute.xlu2 %342 }
 0x19d   :  { %831 = vmatmul.msk.f32.vlgmr.msra.gmra.mxu3 %vm306_vm2, %v343_v30 }
 0x1a4   :  { %v378_v33 = vpop.permute.xlu2 %377 }
 0x1ac   :  { %v413_v40 = vpop.permute.xlu2 %412 }
 0x1ba   :  { %v345_v36 = vpop.permute.xlu0 %344  ;;  %v380_v37 = vpop.permute.xlu1 %379 }
 0x1bb   :  { %832 = vmatmul.msk.f32.gmra.mxu3 %vm306_vm2, %v345_v36  ;;  %833 = vmatpush.xpose.msk.msrb.mxu2 %vm306_vm2, %v380_v37 }
 0x1bc   :  { %837 = vmatpush.xpose.msk.msrb.mxu3 %vm306_vm2, %v380_v37 }
 0x1bf   :  { %834 = vmatpush.xpose.msk.msrb.mxu2 %vm306_vm2, %v378_v33 }
 0x1c0   :  { %838 = vmatpush.xpose.msk.msrb.mxu3 %vm306_vm2, %v378_v33 }
 0x1c2   :  { %v376_v42 = vpop.permute.xlu1 %375 }
 0x1c3   :  { %v374_v41 = vpop.permute.xlu0 %373  ;;  %839 = vmatmul.msk.f32.vlgmr.msrb.gmra.mxu3 %vm306_vm2, %v413_v40 }
 0x1c4   :  { %835 = vmatmul.msk.f32.vlgmr.msrb.gmra.mxu2 %vm306_vm2, %v374_v41 }
 0x1cb   :  { %v415_v43 = vpop.permute.xlu0 %414 }
 0x1cc   :  { %836 = vmatmul.msk.f32.gmra.mxu2 %vm306_vm2, %v376_v42  ;;  %840 = vmatmul.msk.f32.gmra.mxu3 %vm306_vm2, %v415_v43 }
 0x1d3   :  { %v876_v46 = vpop.permute.xlu0 %875  ;;  %v336_v47 = vpop.f32.mrf.mxu2 }
 0x1d4   :  { %v877_v48 = vunpack.i.l.bf16 %v876_v46  ;;  %v337_v49 = vadd.f32 %v336_v47, %v304_v44  ;;  %v878_v50 = vunpack.i.h.bf16 %v876_v46 }
 0x1d6   :  { %565 = vmatpush.msra.mxu2 %v877_v48  ;;  %596 = vmatpush.msra.mxu3 %v877_v48  ;;  %v443_v51 = vsel %vm256_vm0, %v337_v49, -inf }
 0x1d7   :  { %444 = vmax.xlane.f32.xlu0 %v443_v51 }
 0x1d8   :  { %566 = vmatpush.msra.mxu2 %v878_v50  ;;  %597 = vmatpush.msra.mxu3 %v878_v50 }
 0x1db   :  { %v339_v60 = vpop.f32.mrf.mxu2 }
 0x1eb   :  { %880 = vrot.lane.b32.xlu0 %v1222_v45, %s1133_s14  ;;  %v340_v45 = vadd.f32 %v339_v60, %v1242_v39 }
 0x1ed   :  { %v446_v1 = vsel %vm256_vm0, %v340_v45, -inf }
 0x220   :  { %v367_v52 = vpop.f32.mrf.mxu3 }
 0x221   :  { %v368_v53 = vadd.f32 %v367_v52, %v304_v44 }
 0x223   :  { %v449_v54 = vsel %vm256_vm0, %v368_v53, -inf }
 0x224   :  { %450 = vmax.xlane.f32.xlu1 %v449_v54 }
 0x23e   :  { %v370_v58 = vpop.f32.mrf.mxu3 }
 0x23f   :  { %v371_v61 = vadd.f32 %v370_v58, %v1242_v39 }
 0x241   :  { %v452_v62 = vsel %vm256_vm0, %v371_v61, -inf }
 0x242   :  { %453 = vmax.xlane.f32.xlu2 %v452_v62 }
 0x246   :  { %v437_v9 = vpop.f32.mrf.mxu3 }
 0x247   :  { %v406_v63 = vpop.f32.mrf.mxu2  ;;  %v438_v11 = vadd.f32 %v437_v9, %v304_v44 }
 0x248   :  { %v407_v0 = vadd.f32 %v406_v63, %v304_v44  ;;  %v533_v63 = vld [vmem:[#allocation13 + $0x50] sm:$0xff] }
 0x249   :  { %v461_v12 = vsel %vm256_vm0, %v438_v11, -inf }
 0x24a   :  { %v445_v2 = vpop.xlane.xlu0 %444  ;;  %v455_v3 = vsel %vm256_vm0, %v407_v0, -inf  ;;  %447 = vmax.xlane.f32.xlu2 %v446_v1 }
 0x24b   :  { %v467_v4 = vsub.f32 %v337_v49, %v445_v2  ;;  %456 = vmax.xlane.f32.xlu1 %v455_v3  ;;  %v531_v2 = vld [vmem:[#allocation13 + $0x40] sm:$0xff] }
 0x24d   :  { %v475_v5 = vmul.f32 1.442695, %v467_v4 }
 0x24f   :  { %885 = vpow2.f32 %v475_v5  ;;  %v409_v6 = vpop.f32.mrf.mxu2  ;;  %v440_v37 = vpop.f32.mrf.mxu3 }
 0x250   :  { %v410_v7 = vadd.f32 %v409_v6, %v1242_v39  ;;  %v441_v38 = vadd.f32 %v440_v37, %v1242_v39 }
 0x252   :  { %v458_v8 = vsel %vm256_vm0, %v410_v7, -inf  ;;  %v464_v46 = vsel %vm256_vm0, %v441_v38, -inf }
 0x253   :  { %459 = vmax.xlane.f32.xlu1 %v458_v8 }
 0x255   :  { %v886_v10 = vpop.eup %885 }
 0x256   :  { %841 = vmatmul.msk.f32.vlgmr.msra.gmra.mxu2 %vm256_vm0, %v886_v10  ;;  %v491_v16 = vsel %vm256_vm0, %v886_v10, 0.0 }
 0x25b   :  { %462 = vmax.xlane.f32.xlu1 %v461_v12 }
 0x25d   :  { %v881_v13 = vpop.permute.xlu0 %880 }
 0x25e   :  { %v882_v14 = vunpack.i.l.bf16 %v881_v13  ;;  %v883_v15 = vunpack.i.h.bf16 %v881_v13 }
 0x260   :  { %691 = vmatpush.msrb.mxu2 %v882_v14  ;;  %753 = vmatpush.msra.mxu0 %v882_v14 }
 0x262   :  { %692 = vmatpush.msrb.mxu2 %v883_v15  ;;  %754 = vmatpush.msra.mxu0 %v883_v15 }
 0x263   :  { %492 = vadd.xlane.f32.xlu1 %v491_v16 }
 0x297   :  { %v451_v17 = vpop.xlane.xlu1 %450 }
 0x298   :  { %v469_v18 = vsub.f32 %v368_v53, %v451_v17 }
 0x29a   :  { %v479_v19 = vmul.f32 1.442695, %v469_v18 }
 0x29c   :  { %887 = vpow2.f32 %v479_v19 }
 0x2a2   :  { %v888_v20 = vpop.eup %887 }
 0x2a3   :  { %843 = vmatmul.msk.f32.vlgmr.msra.gmra.mxu3 %vm256_vm0, %v888_v20  ;;  %v497_v21 = vsel %vm256_vm0, %v888_v20, 0.0 }
 0x2a4   :  { %498 = vadd.xlane.f32.xlu2 %v497_v21 }
 0x2b5   :  { %v454_v22 = vpop.xlane.xlu2 %453 }
 0x2b6   :  { %v470_v23 = vsub.f32 %v371_v61, %v454_v22 }
 0x2b8   :  { %v481_v24 = vmul.f32 1.442695, %v470_v23  ;;  %v538_v23 = vld [vmem:[#allocation13 + $0x78] sm:$0xff] }
 0x2b9   :  { %782 = vmatpush.msra.mxu1 %v538_v23 }
 0x2ba   :  { %889 = vpow2.f32 %v481_v24  ;;  %v537_v24 = vld [vmem:[#allocation13 + $0x70] sm:$0xff] }
 0x2bb   :  { %783 = vmatpush.msra.mxu1 %v537_v24 }
 0x2bd   :  { %v448_v28 = vpop.xlane.xlu2 %447  ;;  %784 = vmatpush.msra.mxu1 %v536_v25 }
 0x2be   :  { %v457_v29 = vpop.xlane.xlu1 %456  ;;  %v468_v30 = vsub.f32 %v340_v45, %v448_v28  ;;  %v534_v45 = vld [vmem:[#allocation13 + $0x58] sm:$0xff] }
 0x2bf   :  { %v471_v32 = vsub.f32 %v407_v0, %v457_v29  ;;  %720 = vmatpush.msrb.mxu3 %v534_v45  ;;  %v532_v0 = vld [vmem:[#allocation13 + $0x48] sm:$0xff]  ;;  %785 = vmatpush.msra.mxu1 %v535_v26 }
 0x2c0   :  { %v890_v33 = vpop.eup %889  ;;  %v477_v34 = vmul.f32 1.442695, %v468_v30 }
 0x2c1   :  { %v483_v35 = vmul.f32 1.442695, %v471_v32  ;;  %844 = vmatmul.msk.f32.gmra.mxu3 %vm256_vm0, %v890_v33  ;;  %v500_v36 = vsel %vm256_vm0, %v890_v33, 0.0 }
 0x2c2   :  { %891 = vpow2.f32 %v477_v34  ;;  %501 = vadd.xlane.f32.xlu2 %v500_v36  ;;  %721 = vmatpush.msrb.mxu3 %v533_v63 }
 0x2c3   :  { %893 = vpow2.f32 %v483_v35 }
 0x2c4   :  { %722 = vmatpush.msrb.mxu3 %v532_v0 }
 0x2c6   :  { %v460_v40 = vpop.xlane.xlu1 %459  ;;  %723 = vmatpush.msrb.mxu3 %v531_v2 }
 0x2c7   :  { %v472_v41 = vsub.f32 %v410_v7, %v460_v40 }
 0x2c8   :  { %v892_v42 = vpop.eup %891 }
 0x2c9   :  { %v894_v43 = vpop.eup %893  ;;  %v485_v44 = vmul.f32 1.442695, %v472_v41  ;;  %842 = vmatmul.msk.f32.gmra.mxu2 %vm256_vm0, %v892_v42  ;;  %v494_v39 = vsel %vm256_vm0, %v892_v42, 0.0 }
 0x2ca   :  { %465 = vmax.xlane.f32.xlu2 %v464_v46  ;;  %v503_v47 = vsel %vm256_vm0, %v894_v43, 0.0 }
 0x2cb   :  { %895 = vpow2.f32 %v485_v44  ;;  %504 = vadd.xlane.f32.xlu1 %v503_v47 }
 0x2ce   :  { %v463_v48 = vpop.xlane.xlu1 %462 }
 0x2cf   :  { %v473_v49 = vsub.f32 %v438_v11, %v463_v48 }
 0x2d1   :  { %v896_v50 = vpop.eup %895  ;;  %v487_v51 = vmul.f32 1.442695, %v473_v49  ;;  %849 = vmatmul.msk.f32.vlgmr.msrb.gmra.mxu2 %vm256_vm0, %v894_v43  ;;  %v884_v43 = vld [vmem:[%s1305_s7] ss:$0 sm:$0xff] }
 0x2d2   :  { %495 = vadd.xlane.f32.xlu2 %v494_v39  ;;  %v506_v52 = vsel %vm256_vm0, %v896_v50, 0.0 }
 0x2d3   :  { %897 = vpow2.f32 %v487_v51  ;;  %507 = vadd.xlane.f32.xlu0 %v506_v52 }
 0x2d6   :  { %v493_v53 = vpop.xlane.xlu1 %492 }
 0x2d7   :  { %899 = vrcp.f32 %v493_v53 }
 0x2d9   :  { %v898_v54 = vpop.eup %897  ;;  %850 = vmatmul.msk.f32.gmra.mxu2 %vm256_vm0, %v896_v50  ;;  %v568_v57 = vpop.f32.mrf.mxu2 }
 0x2da   :  { %v509_v55 = vsel %vm256_vm0, %v898_v54, 0.0 }
 0x2db   :  { %510 = vadd.xlane.f32.xlu2 %v509_v55 }
 0x2dd   :  { %v900_v56 = vpop.eup %899 }
 0x2de   :  { %v574_v58 = vmul.f32 %v900_v56, %v568_v57 }
 0x2e0   :  { %847 = vmatmul.msk.f32.vlgmr.msrb.gmra.mxu1 %vm306_vm2, %v574_v58 }
 0x317   :  { %v499_v59 = vpop.xlane.xlu2 %498 }
 0x318   :  { %901 = vrcp.f32 %v499_v59 }
 0x31e   :  { %v902_v60 = vpop.eup %901 }
 0x326   :  { %v599_v61 = vpop.f32.mrf.mxu3 }
 0x327   :  { %v605_v62 = vmul.f32 %v902_v60, %v599_v61 }
 0x329   :  { %845 = vmatmul.msk.f32.vlgmr.msrb.gmra.mxu0 %vm306_vm2, %v605_v62 }
 0x335   :  { %v502_v1 = vpop.xlane.xlu2 %501 }
 0x336   :  { %903 = vrcp.f32 %v502_v1 }
 0x33c   :  { %v904_v6 = vpop.eup %903 }
 0x33d   :  { %v466_v3 = vpop.xlane.xlu2 %465 }
 0x33e   :  { %v474_v4 = vsub.f32 %v441_v38, %v466_v3  ;;  %v505_v12 = vpop.xlane.xlu1 %504 }
 0x340   :  { %v489_v5 = vmul.f32 1.442695, %v474_v4 }
 0x342   :  { %905 = vpow2.f32 %v489_v5 }
 0x344   :  { %v602_v7 = vpop.f32.mrf.mxu3 }
 0x345   :  { %v606_v8 = vmul.f32 %v904_v6, %v602_v7  ;;  %v496_v9 = vpop.xlane.xlu2 %495 }
 0x346   :  { %907 = vrcp.f32 %v496_v9  ;;  %v508_v16 = vpop.xlane.xlu0 %507 }
 0x347   :  { %846 = vmatmul.msk.f32.gmra.mxu0 %vm306_vm2, %v606_v8  ;;  %909 = vrcp.f32 %v505_v12 }
 0x348   :  { %v906_v10 = vpop.eup %905  ;;  %911 = vrcp.f32 %v508_v16 }
 0x349   :  { %v512_v11 = vsel %vm256_vm0, %v906_v10, 0.0 }
 0x34a   :  { %513 = vadd.xlane.f32.xlu1 %v512_v11 }
 0x34c   :  { %v908_v13 = vpop.eup %907  ;;  %v571_v14 = vpop.f32.mrf.mxu2 }
 0x34d   :  { %v575_v15 = vmul.f32 %v908_v13, %v571_v14  ;;  %v910_v17 = vpop.eup %909 }
 0x34e   :  { %v912_v20 = vpop.eup %911  ;;  %v511_v28 = vpop.xlane.xlu2 %510 }
 0x34f   :  { %848 = vmatmul.msk.f32.gmra.mxu1 %vm306_vm2, %v575_v15  ;;  %853 = vmatmul.msk.f32.vlgmr.msra.gmra.mxu0 %vm256_vm0, %v898_v54  ;;  %913 = vrcp.f32 %v511_v28 }
 0x354   :  { %v694_v18 = vpop.f32.mrf.mxu2 }
 0x355   :  { %v700_v19 = vmul.f32 %v910_v17, %v694_v18  ;;  %v914_v31 = vpop.eup %913 }
 0x357   :  { %851 = vmatmul.msk.f32.vlgmr.msrb.gmra.mxu3 %vm306_vm2, %v700_v19  ;;  %854 = vmatmul.msk.f32.gmra.mxu0 %vm256_vm0, %v906_v10 }
 0x35c   :  { %v697_v21 = vpop.f32.mrf.mxu2 }
 0x35d   :  { %v701_v22 = vmul.f32 %v912_v20, %v697_v21  ;;  %v659_v37 = vpop.f32.mrf.mxu1 }
 0x35f   :  { %852 = vmatmul.msk.f32.gmra.mxu3 %vm306_vm2, %v701_v22 }
 0x3a6   :  { %v630_v27 = vpop.f32.mrf.mxu0 }
 0x3a7   :  { %v660_v41 = vadd.f32 %v659_v37, %v630_v27 }
 0x3bd   :  { %v514_v30 = vpop.xlane.xlu1 %513 }
 0x3be   :  { %915 = vrcp.f32 %v514_v30 }
 0x3c4   :  { %v633_v29 = vpop.f32.mrf.mxu0  ;;  %v916_v34 = vpop.eup %915 }
 0x3cc   :  { %v756_v32 = vpop.f32.mrf.mxu0  ;;  %v662_v38 = vpop.f32.mrf.mxu1 }
 0x3cd   :  { %v762_v33 = vmul.f32 %v914_v31, %v756_v32  ;;  %v663_v49 = vadd.f32 %v662_v38, %v633_v29 }
 0x3cf   :  { %855 = vmatmul.msk.f32.vlgmr.msra.gmra.mxu1 %vm306_vm2, %v762_v33 }
 0x3d4   :  { %v759_v35 = vpop.f32.mrf.mxu0 }
 0x3d5   :  { %v763_v36 = vmul.f32 %v916_v34, %v759_v35 }
 0x3d7   :  { %856 = vmatmul.msk.f32.gmra.mxu1 %vm306_vm2, %v763_v36 }
 0x3da   :  { %v725_v40 = vpop.f32.mrf.mxu3 }
 0x3db   :  { %v731_v42 = vadd.f32 %v725_v40, %v660_v41 }
 0x3e2   :  { %v728_v48 = vpop.f32.mrf.mxu3 }
 0x3e3   :  { %v732_v50 = vadd.f32 %v728_v48, %v663_v49 }
 0x44c   :  { %v787_v44 = vpop.f32.mrf.mxu1 }
 0x44d   :  { %v793_v46 = vadd.f32 %v787_v44, %v731_v42 }
 0x44f   :  { %v799_v47 = vadd.f32 %v884_v43, %v793_v46 }
 0x451   :  { %801 = vst [vmem:[#allocation14] sm:$0xff] %v799_v47 }
 0x454   :  { %v790_v51 = vpop.f32.mrf.mxu1 }
 0x455   :  { %v794_v39 = vadd.f32 %v790_v51, %v732_v50 }
 0x457   :  { %v800_v52 = vadd.f32 %v884_v43, %v794_v39 }
 0x459   :  { %802 = vst [vmem:[#allocation14 + $0x8] sm:$0xff] %v800_v52 }
 0x45a   :  { %815 = dma.vmem_to_hbm [thread:$0]  %s808_s20, 256, %s810_s23, [#allocation4], %s1125_s24, %s1125_s24, %s1126_s25  }
 0x45b   :  { %1117 = dma.done.wait [#allocation4], 256  }
 0x45c   :  { %1118 = vsyncadd [#allocation4], 4294967040 }
 0x45d   :  { %820 = vsyncpa [#allocation3], 1 }
 0x45e   :  { %821 = vsyncpa [#allocation6], 1 }
 0x45f   :  { %822 = vsyncpa [#allocation9], 1 }
 0x460   :  { %823 = vsyncpa [#allocation12], 1 }
 0x461   :  { %824 = vsyncpa [#allocation4], 1 }

</bundles_post_ra>
